<compile_context>
chip_gen: v5e
topology: v5e:2x2
jax: 0.10.0
libtpu: 0.0.40
codegen_flags: <defaults>
</compile_context>

<pallas_src>
import numpy as np
import jax
import jax.numpy as jnp
from jax.experimental import pallas as pl
from jax.experimental.pallas import tpu as pltpu

L0 = 30                                            # required input length
CONV_CFG = [(1, 4), (4, 8), (8, 10), (10, 8), (8, 4)]  # (C_in, C_out) per conv


def _round_up(x, m):
    return ((x + m - 1) // m) * m


# ----------------------------------------------------------------------------
# Kernel: whole network on one (features, B) activation slab.
# ----------------------------------------------------------------------------
def cnn_kernel(x_ref,
               w1, b1, w2, b2, w3, b3, w4, b4, w5, b5,
               wf1, bf1, wf2, bf2,
               o_ref):
    h = x_ref[...]                                   # (32, B) f32, batch on lanes
    for w_ref, b_ref in ((w1, b1), (w2, b2), (w3, b3), (w4, b4), (w5, b5)):
        f = b_ref.shape[0]                           # padded feature count (mult of 8)
        y = jnp.dot(w_ref[...], h, preferred_element_type=jnp.float32)  # (2f, B)
        # rows [0:f) = conv output at even pool positions, [f:2f) = odd positions
        h = jnp.maximum(jnp.maximum(y[:f, :], y[f:, :]) + b_ref[...], 0.0)
    # fc1 (padded 8 -> 16, rows >= 10 are exactly zero) + ReLU
    z = jnp.maximum(
        jnp.dot(wf1[...], h, preferred_element_type=jnp.float32) + bf1[...], 0.0)
    # fc2 (16 -> 1) + sigmoid; exp goes to the EUP slot
    logit = jnp.dot(wf2[...], z, preferred_element_type=jnp.float32) + bf2[...]
    o_ref[...] = 1.0 / (1.0 + jnp.exp(-logit))       # (1, B) lane-dense store


# ----------------------------------------------------------------------------
# Wrapper: tile the batch along lanes, B samples per grid step.
# ----------------------------------------------------------------------------
def cnn_forward(x_ncl, fused_params, block_n=256):
    """x_ncl: (N, 1, L0) torch-style NCL input. Returns (N, 1) probabilities."""
    n = x_ncl.shape[0]
    k0 = fused_params[0].shape[1]                    # padded input features (32)
    x2d = jnp.transpose(x_ncl[:, 0, :], (1, 0))      # (L0, N), batch on lanes
    b_lanes = min(block_n, _round_up(max(n, 1), 128))
    n_pad = _round_up(n, b_lanes)
    x2d = jnp.pad(x2d, ((0, k0 - L0), (0, n_pad - n)))

    in_specs = [pl.BlockSpec((k0, b_lanes), lambda i: (0, i))]
    for p in fused_params:
        # Constant index_map -> parameter is DMA'd once and stays VMEM-resident.
        in_specs.append(pl.BlockSpec(p.shape, lambda i: (0, 0)))

    out = pl.pallas_call(
        cnn_kernel,
        out_shape=jax.ShapeDtypeStruct((1, n_pad), jnp.float32),
        grid=(n_pad // b_lanes,),
        in_specs=in_specs,
        out_specs=pl.BlockSpec((1, b_lanes), lambda i: (0, i)),
        compiler_params=pltpu.CompilerParams(
            dimension_semantics=("parallel",)),      # independent samples -> both TCs on v7x
    )(x2d, *fused_params)
    return out[0, :n].reshape(n, 1)


# ----------------------------------------------------------------------------
# Host-side parameter fusion (im2col + pool-split + padding to multiples of 8).
# ----------------------------------------------------------------------------
def build_fused_params(raw):
    """raw: torch-layout params -> 14 fused arrays consumed by the kernel."""
    fused = []
    l_in = L0
    k_pad = _round_up(1 * L0, 8)                     # 32 padded input rows
    for (c_in, c_out), (w, b) in zip(CONV_CFG, raw['conv']):
        # w: (c_out, c_in, 3) torch Conv1d weight, b: (c_out,)
        l_conv = l_in + 2                            # pad=2, k=3, stride=1
        l_pool = l_conv // 2                         # MaxPool1d(2), floor mode
        f_real = c_out * l_pool
        f_pad = _round_up(f_real, 8)
        W = np.zeros((2 * f_pad, k_pad), np.float32)
        for co in range(c_out):
            for j in range(l_pool):
                for parity, base in ((0, 0), (1, f_pad)):
                    lo = 2 * j + parity              # conv output position
                    for ci in range(c_in):
                        for k in range(3):
                            li = lo - 2 + k          # input position (pad=2)
                            if 0 <= li < l_in:
                                W[base + co * l_pool + j, ci * l_in + li] += \
                                    float(w[co, ci, k])
        bias = np.zeros((f_pad, 1), np.float32)
        for co in range(c_out):
            bias[co * l_pool:(co + 1) * l_pool, 0] = float(b[co])
        fused += [jnp.asarray(W), jnp.asarray(bias)]
        l_in, k_pad = l_pool, f_pad

    # fc1: (10, 8) acting on channel-major features == torch x.view(N, 8); pad to 16 rows.
    w1, b1 = raw['fc1']
    W1 = np.zeros((16, 8), np.float32); W1[:10, :] = np.asarray(w1, np.float32)
    B1 = np.zeros((16, 1), np.float32); B1[:10, 0] = np.asarray(b1, np.float32)
    # fc2: (1, 10) padded to (1, 16) (extra columns hit exact-zero padded features).
    w2, b2 = raw['fc2']
    W2 = np.zeros((1, 16), np.float32); W2[0, :10] = np.asarray(w2, np.float32)[0]
    B2 = np.asarray(b2, np.float32).reshape(1, 1)
    fused += [jnp.asarray(W1), jnp.asarray(B1), jnp.asarray(W2), jnp.asarray(B2)]
    return fused


def init_raw_params(key):
    """Deterministic init mirroring PyTorch's default uniform(+-1/sqrt(fan_in))."""
    keys = iter(jax.random.split(key, 14))
    convs = []
    for c_in, c_out in CONV_CFG:
        bound = 1.0 / np.sqrt(c_in * 3)
        w = jax.random.uniform(next(keys), (c_out, c_in, 3), jnp.float32, -bound, bound)
        b = jax.random.uniform(next(keys), (c_out,), jnp.float32, -bound, bound)
        convs.append((np.asarray(w), np.asarray(b)))
    bound = 1.0 / np.sqrt(8.0)
    fc1 = (np.asarray(jax.random.uniform(next(keys), (10, 8), jnp.float32, -bound, bound)),
           np.asarray(jax.random.uniform(next(keys), (10,), jnp.float32, -bound, bound)))
    bound = 1.0 / np.sqrt(10.0)
    fc2 = (np.asarray(jax.random.uniform(next(keys), (1, 10), jnp.float32, -bound, bound)),
           np.asarray(jax.random.uniform(next(keys), (1,), jnp.float32, -bound, bound)))
    # NOTE: nn.AvgPool1d (self.mean) is defined in the module but unused in forward.
    return {'conv': convs, 'fc1': fc1, 'fc2': fc2}


# ----------------------------------------------------------------------------
# Plain-JAX reference of the PyTorch forward (NCL layout), from raw params.
# ----------------------------------------------------------------------------
def reference_forward(x_ncl, raw):
    h = x_ncl.astype(jnp.float32)
    for (w, b) in raw['conv']:
        n, c_in, l = h.shape
        c_out = w.shape[0]
        l_out = l + 2
        hp = jnp.pad(h, ((0, 0), (0, 0), (2, 2)))
        acc = jnp.asarray(b, jnp.float32)[None, :, None]
        for k in range(3):
            acc = acc + jnp.einsum('ncl,oc->nol', hp[:, :, k:k + l_out],
                                   jnp.asarray(w, jnp.float32)[:, :, k])
        h = jax.nn.relu(acc)
        p = l_out // 2
        h = h[:, :, :2 * p].reshape(n, c_out, p, 2).max(axis=3)
    n = h.shape[0]
    feat = h.reshape(n, 8)                           # torch x.view(N, 8), channel-major
    w1, b1 = raw['fc1']; w2, b2 = raw['fc2']
    z = jax.nn.relu(feat @ jnp.asarray(w1).T + jnp.asarray(b1))
    return jax.nn.sigmoid(z @ jnp.asarray(w2).T + jnp.asarray(b2))


if __name__ == "__main__":
    key = jax.random.PRNGKey(0)
    kp, kx1, kx2 = jax.random.split(key, 3)
    raw = init_raw_params(kp)
    fused = build_fused_params(raw)

    # Small batch (pads up to one 128-lane block).
    x_small = jax.random.normal(kx1, (2, 1, L0), jnp.float32)     # (N, C=1, L=30)
    out_small = jax.block_until_ready(cnn_forward(x_small, fused))
    np.testing.assert_allclose(np.asarray(out_small),
                               np.asarray(reference_forward(x_small, raw)),
                               rtol=1e-3, atol=1e-3)

    # Larger batch to exercise a multi-step grid (2 blocks of 256 lanes).
    x_big = jax.random.normal(kx2, (300, 1, L0), jnp.float32)
    out_big = jax.block_until_ready(cnn_forward(x_big, fused))
    np.testing.assert_allclose(np.asarray(out_big),
                               np.asarray(reference_forward(x_big, raw)),
                               rtol=1e-3, atol=1e-3)

    print("KERNEL_OK")
</pallas_src>

<mosaic_0001>
module attributes {stable_mosaic.version = 11 : i64} {
  func.func @cnn_kernel(%arg0: i32, %arg1: memref<32x128xf32, #tpu.memory_space<vmem>>, %arg2: memref<128x32xf32, #tpu.memory_space<vmem>>, %arg3: memref<64x1xf32, #tpu.memory_space<vmem>>, %arg4: memref<144x64xf32, #tpu.memory_space<vmem>>, %arg5: memref<72x1xf32, #tpu.memory_space<vmem>>, %arg6: memref<112x72xf32, #tpu.memory_space<vmem>>, %arg7: memref<56x1xf32, #tpu.memory_space<vmem>>, %arg8: memref<48x56xf32, #tpu.memory_space<vmem>>, %arg9: memref<24x1xf32, #tpu.memory_space<vmem>>, %arg10: memref<16x24xf32, #tpu.memory_space<vmem>>, %arg11: memref<8x1xf32, #tpu.memory_space<vmem>>, %arg12: memref<16x8xf32, #tpu.memory_space<vmem>>, %arg13: memref<16x1xf32, #tpu.memory_space<vmem>>, %arg14: memref<1x16xf32, #tpu.memory_space<vmem>>, %arg15: memref<1x1xf32, #tpu.memory_space<vmem>>, %arg16: memref<1x128xf32, #tpu.memory_space<vmem>>) attributes {dimension_semantics = [#tpu.dimension_semantics<parallel>], iteration_bounds = array<i64: 1>, scalar_prefetch = 0 : i64, scratch_operands = 0 : i64, tpu.core_type = #tpu.core_type<tc>, window_params = [{transform_indices = @transform_0, window_bounds = array<i64: 32, 128>}, {pipeline_mode = #tpu.pipeline_mode<synchronous>, transform_indices = @transform_1, window_bounds = array<i64: 128, 32>}, {pipeline_mode = #tpu.pipeline_mode<synchronous>, transform_indices = @transform_2, window_bounds = array<i64: 64, 1>}, {pipeline_mode = #tpu.pipeline_mode<synchronous>, transform_indices = @transform_3, window_bounds = array<i64: 144, 64>}, {pipeline_mode = #tpu.pipeline_mode<synchronous>, transform_indices = @transform_4, window_bounds = array<i64: 72, 1>}, {pipeline_mode = #tpu.pipeline_mode<synchronous>, transform_indices = @transform_5, window_bounds = array<i64: 112, 72>}, {pipeline_mode = #tpu.pipeline_mode<synchronous>, transform_indices = @transform_6, window_bounds = array<i64: 56, 1>}, {pipeline_mode = #tpu.pipeline_mode<synchronous>, transform_indices = @transform_7, window_bounds = array<i64: 48, 56>}, {pipeline_mode = #tpu.pipeline_mode<synchronous>, transform_indices = @transform_8, window_bounds = array<i64: 24, 1>}, {pipeline_mode = #tpu.pipeline_mode<synchronous>, transform_indices = @transform_9, window_bounds = array<i64: 16, 24>}, {pipeline_mode = #tpu.pipeline_mode<synchronous>, transform_indices = @transform_10, window_bounds = array<i64: 8, 1>}, {pipeline_mode = #tpu.pipeline_mode<synchronous>, transform_indices = @transform_11, window_bounds = array<i64: 16, 8>}, {pipeline_mode = #tpu.pipeline_mode<synchronous>, transform_indices = @transform_12, window_bounds = array<i64: 16, 1>}, {pipeline_mode = #tpu.pipeline_mode<synchronous>, transform_indices = @transform_13, window_bounds = array<i64: 1, 16>}, {pipeline_mode = #tpu.pipeline_mode<synchronous>, transform_indices = @transform_14, window_bounds = array<i64: 1, 1>}, {transform_indices = @transform_15, window_bounds = array<i64: 1, 128>}]} {
    %c0 = arith.constant 0 : index
    %c0_0 = arith.constant 0 : index
    %0 = vector.load %arg1[%c0, %c0_0] : memref<32x128xf32, #tpu.memory_space<vmem>>, vector<32x128xf32>
    %c0_1 = arith.constant 0 : index
    %c0_2 = arith.constant 0 : index
    %1 = vector.load %arg2[%c0_1, %c0_2] : memref<128x32xf32, #tpu.memory_space<vmem>>, vector<128x32xf32>
    %cst = arith.constant dense<0.000000e+00> : vector<128x128xf32>
    %2 = tpu.matmul %1, %0, %cst {dimension_numbers = #tpu.dot_dimension_numbers<[1], [0], [0], [1], [0, 0, 1, 1], [], []>} : vector<128x32xf32>, vector<32x128xf32>, vector<128x128xf32> -> vector<128x128xf32>
    %3 = vector.extract_strided_slice %2 {offsets = [0, 0], sizes = [64, 128], strides = [1, 1]} : vector<128x128xf32> to vector<64x128xf32>
    %4 = vector.extract_strided_slice %2 {offsets = [64, 0], sizes = [64, 128], strides = [1, 1]} : vector<128x128xf32> to vector<64x128xf32>
    %5 = arith.maximumf %3, %4 : vector<64x128xf32>
    %c0_3 = arith.constant 0 : index
    %c0_4 = arith.constant 0 : index
    %6 = vector.load %arg3[%c0_3, %c0_4] : memref<64x1xf32, #tpu.memory_space<vmem>>, vector<64x1xf32>
    %7 = vector.broadcast %6 : vector<64x1xf32> to vector<64x128xf32>
    %8 = arith.addf %5, %7 : vector<64x128xf32>
    %cst_5 = arith.constant 0.000000e+00 : f32
    %9 = vector.broadcast %cst_5 : f32 to vector<64x128xf32>
    %10 = arith.maximumf %8, %9 : vector<64x128xf32>
    %c0_6 = arith.constant 0 : index
    %c0_7 = arith.constant 0 : index
    %11 = vector.load %arg4[%c0_6, %c0_7] : memref<144x64xf32, #tpu.memory_space<vmem>>, vector<144x64xf32>
    %cst_8 = arith.constant dense<0.000000e+00> : vector<144x128xf32>
    %12 = tpu.matmul %11, %10, %cst_8 {dimension_numbers = #tpu.dot_dimension_numbers<[1], [0], [0], [1], [0, 0, 1, 1], [], []>} : vector<144x64xf32>, vector<64x128xf32>, vector<144x128xf32> -> vector<144x128xf32>
    %13 = vector.extract_strided_slice %12 {offsets = [0, 0], sizes = [72, 128], strides = [1, 1]} : vector<144x128xf32> to vector<72x128xf32>
    %14 = vector.extract_strided_slice %12 {offsets = [72, 0], sizes = [72, 128], strides = [1, 1]} : vector<144x128xf32> to vector<72x128xf32>
    %15 = arith.maximumf %13, %14 : vector<72x128xf32>
    %c0_9 = arith.constant 0 : index
    %c0_10 = arith.constant 0 : index
    %16 = vector.load %arg5[%c0_9, %c0_10] : memref<72x1xf32, #tpu.memory_space<vmem>>, vector<72x1xf32>
    %17 = vector.broadcast %16 : vector<72x1xf32> to vector<72x128xf32>
    %18 = arith.addf %15, %17 : vector<72x128xf32>
    %cst_11 = arith.constant 0.000000e+00 : f32
    %19 = vector.broadcast %cst_11 : f32 to vector<72x128xf32>
    %20 = arith.maximumf %18, %19 : vector<72x128xf32>
    %c0_12 = arith.constant 0 : index
    %c0_13 = arith.constant 0 : index
    %21 = vector.load %arg6[%c0_12, %c0_13] : memref<112x72xf32, #tpu.memory_space<vmem>>, vector<112x72xf32>
    %cst_14 = arith.constant dense<0.000000e+00> : vector<112x128xf32>
    %22 = tpu.matmul %21, %20, %cst_14 {dimension_numbers = #tpu.dot_dimension_numbers<[1], [0], [0], [1], [0, 0, 1, 1], [], []>} : vector<112x72xf32>, vector<72x128xf32>, vector<112x128xf32> -> vector<112x128xf32>
    %23 = vector.extract_strided_slice %22 {offsets = [0, 0], sizes = [56, 128], strides = [1, 1]} : vector<112x128xf32> to vector<56x128xf32>
    %24 = vector.extract_strided_slice %22 {offsets = [56, 0], sizes = [56, 128], strides = [1, 1]} : vector<112x128xf32> to vector<56x128xf32>
    %25 = arith.maximumf %23, %24 : vector<56x128xf32>
    %c0_15 = arith.constant 0 : index
    %c0_16 = arith.constant 0 : index
    %26 = vector.load %arg7[%c0_15, %c0_16] : memref<56x1xf32, #tpu.memory_space<vmem>>, vector<56x1xf32>
    %27 = vector.broadcast %26 : vector<56x1xf32> to vector<56x128xf32>
    %28 = arith.addf %25, %27 : vector<56x128xf32>
    %cst_17 = arith.constant 0.000000e+00 : f32
    %29 = vector.broadcast %cst_17 : f32 to vector<56x128xf32>
    %30 = arith.maximumf %28, %29 : vector<56x128xf32>
    %c0_18 = arith.constant 0 : index
    %c0_19 = arith.constant 0 : index
    %31 = vector.load %arg8[%c0_18, %c0_19] : memref<48x56xf32, #tpu.memory_space<vmem>>, vector<48x56xf32>
    %cst_20 = arith.constant dense<0.000000e+00> : vector<48x128xf32>
    %32 = tpu.matmul %31, %30, %cst_20 {dimension_numbers = #tpu.dot_dimension_numbers<[1], [0], [0], [1], [0, 0, 1, 1], [], []>} : vector<48x56xf32>, vector<56x128xf32>, vector<48x128xf32> -> vector<48x128xf32>
    %33 = vector.extract_strided_slice %32 {offsets = [0, 0], sizes = [24, 128], strides = [1, 1]} : vector<48x128xf32> to vector<24x128xf32>
    %34 = vector.extract_strided_slice %32 {offsets = [24, 0], sizes = [24, 128], strides = [1, 1]} : vector<48x128xf32> to vector<24x128xf32>
    %35 = arith.maximumf %33, %34 : vector<24x128xf32>
    %c0_21 = arith.constant 0 : index
    %c0_22 = arith.constant 0 : index
    %36 = vector.load %arg9[%c0_21, %c0_22] : memref<24x1xf32, #tpu.memory_space<vmem>>, vector<24x1xf32>
    %37 = vector.broadcast %36 : vector<24x1xf32> to vector<24x128xf32>
    %38 = arith.addf %35, %37 : vector<24x128xf32>
    %cst_23 = arith.constant 0.000000e+00 : f32
    %39 = vector.broadcast %cst_23 : f32 to vector<24x128xf32>
    %40 = arith.maximumf %38, %39 : vector<24x128xf32>
    %c0_24 = arith.constant 0 : index
    %c0_25 = arith.constant 0 : index
    %41 = vector.load %arg10[%c0_24, %c0_25] : memref<16x24xf32, #tpu.memory_space<vmem>>, vector<16x24xf32>
    %cst_26 = arith.constant dense<0.000000e+00> : vector<16x128xf32>
    %42 = tpu.matmul %41, %40, %cst_26 {dimension_numbers = #tpu.dot_dimension_numbers<[1], [0], [0], [1], [0, 0, 1, 1], [], []>} : vector<16x24xf32>, vector<24x128xf32>, vector<16x128xf32> -> vector<16x128xf32>
    %43 = vector.extract_strided_slice %42 {offsets = [0, 0], sizes = [8, 128], strides = [1, 1]} : vector<16x128xf32> to vector<8x128xf32>
    %44 = vector.extract_strided_slice %42 {offsets = [8, 0], sizes = [8, 128], strides = [1, 1]} : vector<16x128xf32> to vector<8x128xf32>
    %45 = arith.maximumf %43, %44 : vector<8x128xf32>
    %c0_27 = arith.constant 0 : index
    %c0_28 = arith.constant 0 : index
    %46 = vector.load %arg11[%c0_27, %c0_28] : memref<8x1xf32, #tpu.memory_space<vmem>>, vector<8x1xf32>
    %47 = vector.broadcast %46 : vector<8x1xf32> to vector<8x128xf32>
    %48 = arith.addf %45, %47 : vector<8x128xf32>
    %cst_29 = arith.constant 0.000000e+00 : f32
    %49 = vector.broadcast %cst_29 : f32 to vector<8x128xf32>
    %50 = arith.maximumf %48, %49 : vector<8x128xf32>
    %c0_30 = arith.constant 0 : index
    %c0_31 = arith.constant 0 : index
    %51 = vector.load %arg12[%c0_30, %c0_31] : memref<16x8xf32, #tpu.memory_space<vmem>>, vector<16x8xf32>
    %cst_32 = arith.constant dense<0.000000e+00> : vector<16x128xf32>
    %52 = tpu.matmul %51, %50, %cst_32 {dimension_numbers = #tpu.dot_dimension_numbers<[1], [0], [0], [1], [0, 0, 1, 1], [], []>} : vector<16x8xf32>, vector<8x128xf32>, vector<16x128xf32> -> vector<16x128xf32>
    %c0_33 = arith.constant 0 : index
    %c0_34 = arith.constant 0 : index
    %53 = vector.load %arg13[%c0_33, %c0_34] : memref<16x1xf32, #tpu.memory_space<vmem>>, vector<16x1xf32>
    %54 = vector.broadcast %53 : vector<16x1xf32> to vector<16x128xf32>
    %55 = arith.addf %52, %54 : vector<16x128xf32>
    %cst_35 = arith.constant 0.000000e+00 : f32
    %56 = vector.broadcast %cst_35 : f32 to vector<16x128xf32>
    %57 = arith.maximumf %55, %56 : vector<16x128xf32>
    %c0_36 = arith.constant 0 : index
    %c0_37 = arith.constant 0 : index
    %58 = vector.load %arg14[%c0_36, %c0_37] : memref<1x16xf32, #tpu.memory_space<vmem>>, vector<1x16xf32>
    %cst_38 = arith.constant dense<0.000000e+00> : vector<1x128xf32>
    %59 = tpu.matmul %58, %57, %cst_38 {dimension_numbers = #tpu.dot_dimension_numbers<[1], [0], [0], [1], [0, 0, 1, 1], [], []>} : vector<1x16xf32>, vector<16x128xf32>, vector<1x128xf32> -> vector<1x128xf32>
    %c0_39 = arith.constant 0 : index
    %c0_40 = arith.constant 0 : index
    %60 = vector.load %arg15[%c0_39, %c0_40] : memref<1x1xf32, #tpu.memory_space<vmem>>, vector<1x1xf32>
    %61 = vector.broadcast %60 : vector<1x1xf32> to vector<1x128xf32>
    %62 = arith.addf %59, %61 : vector<1x128xf32>
    %cst_41 = arith.constant 0.000000e+00 : f32
    %63 = vector.broadcast %cst_41 : f32 to vector<1x128xf32>
    %64 = arith.subf %63, %62 : vector<1x128xf32>
    %65 = math.exp %64 : vector<1x128xf32>
    %cst_42 = arith.constant 1.000000e+00 : f32
    %66 = vector.broadcast %cst_42 : f32 to vector<1x128xf32>
    %67 = arith.addf %66, %65 : vector<1x128xf32>
    %cst_43 = arith.constant 1.000000e+00 : f32
    %68 = vector.broadcast %cst_43 : f32 to vector<1x128xf32>
    %69 = arith.divf %68, %67 : vector<1x128xf32>
    %c0_44 = arith.constant 0 : index
    %c0_45 = arith.constant 0 : index
    %70 = vector.load %arg16[%c0_44, %c0_45] : memref<1x128xf32, #tpu.memory_space<vmem>>, vector<1x128xf32>
    tpu.vector_store %arg16[%c0_44, %c0_45], %69 {strides = array<i32>} : memref<1x128xf32, #tpu.memory_space<vmem>>, vector<1x128xf32>,
    return
  }
  func.func @transform_0(%arg0: i32) -> (i32, i32) {
    %c0_i32 = arith.constant 0 : i32
    %c0_i32_0 = arith.constant 0 : i32
    return %c0_i32, %arg0 : i32, i32
  }
  func.func @transform_1(%arg0: i32) -> (i32, i32) {
    %c0_i32 = arith.constant 0 : i32
    %c0_i32_0 = arith.constant 0 : i32
    %c0_i32_1 = arith.constant 0 : i32
    return %c0_i32, %c0_i32_0 : i32, i32
  }
  func.func @transform_2(%arg0: i32) -> (i32, i32) {
    %c0_i32 = arith.constant 0 : i32
    %c0_i32_0 = arith.constant 0 : i32
    %c0_i32_1 = arith.constant 0 : i32
    return %c0_i32, %c0_i32_0 : i32, i32
  }
  func.func @transform_3(%arg0: i32) -> (i32, i32) {
    %c0_i32 = arith.constant 0 : i32
    %c0_i32_0 = arith.constant 0 : i32
    %c0_i32_1 = arith.constant 0 : i32
    return %c0_i32, %c0_i32_0 : i32, i32
  }
  func.func @transform_4(%arg0: i32) -> (i32, i32) {
    %c0_i32 = arith.constant 0 : i32
    %c0_i32_0 = arith.constant 0 : i32
    %c0_i32_1 = arith.constant 0 : i32
    return %c0_i32, %c0_i32_0 : i32, i32
  }
  func.func @transform_5(%arg0: i32) -> (i32, i32) {
    %c0_i32 = arith.constant 0 : i32
    %c0_i32_0 = arith.constant 0 : i32
    %c0_i32_1 = arith.constant 0 : i32
    return %c0_i32, %c0_i32_0 : i32, i32
  }
  func.func @transform_6(%arg0: i32) -> (i32, i32) {
    %c0_i32 = arith.constant 0 : i32
    %c0_i32_0 = arith.constant 0 : i32
    %c0_i32_1 = arith.constant 0 : i32
    return %c0_i32, %c0_i32_0 : i32, i32
  }
  func.func @transform_7(%arg0: i32) -> (i32, i32) {
    %c0_i32 = arith.constant 0 : i32
    %c0_i32_0 = arith.constant 0 : i32
    %c0_i32_1 = arith.constant 0 : i32
    return %c0_i32, %c0_i32_0 : i32, i32
  }
  func.func @transform_8(%arg0: i32) -> (i32, i32) {
    %c0_i32 = arith.constant 0 : i32
    %c0_i32_0 = arith.constant 0 : i32
    %c0_i32_1 = arith.constant 0 : i32
    return %c0_i32, %c0_i32_0 : i32, i32
  }
  func.func @transform_9(%arg0: i32) -> (i32, i32) {
    %c0_i32 = arith.constant 0 : i32
    %c0_i32_0 = arith.constant 0 : i32
    %c0_i32_1 = arith.constant 0 : i32
    return %c0_i32, %c0_i32_0 : i32, i32
  }
  func.func @transform_10(%arg0: i32) -> (i32, i32) {
    %c0_i32 = arith.constant 0 : i32
    %c0_i32_0 = arith.constant 0 : i32
    %c0_i32_1 = arith.constant 0 : i32
    return %c0_i32, %c0_i32_0 : i32, i32
  }
  func.func @transform_11(%arg0: i32) -> (i32, i32) {
    %c0_i32 = arith.constant 0 : i32
    %c0_i32_0 = arith.constant 0 : i32
    %c0_i32_1 = arith.constant 0 : i32
    return %c0_i32, %c0_i32_0 : i32, i32
  }
  func.func @transform_12(%arg0: i32) -> (i32, i32) {
    %c0_i32 = arith.constant 0 : i32
    %c0_i32_0 = arith.constant 0 : i32
    %c0_i32_1 = arith.constant 0 : i32
    return %c0_i32, %c0_i32_0 : i32, i32
  }
  func.func @transform_13(%arg0: i32) -> (i32, i32) {
    %c0_i32 = arith.constant 0 : i32
    %c0_i32_0 = arith.constant 0 : i32
    %c0_i32_1 = arith.constant 0 : i32
    return %c0_i32, %c0_i32_0 : i32, i32
  }
  func.func @transform_14(%arg0: i32) -> (i32, i32) {
    %c0_i32 = arith.constant 0 : i32
    %c0_i32_0 = arith.constant 0 : i32
    %c0_i32_1 = arith.constant 0 : i32
    return %c0_i32, %c0_i32_0 : i32, i32
  }
  func.func @transform_15(%arg0: i32) -> (i32, i32) {
    %c0_i32 = arith.constant 0 : i32
    %c0_i32_0 = arith.constant 0 : i32
    return %c0_i32, %arg0 : i32, i32
  }
}

</mosaic_0001>

<bundles_post_ra>
// kernel: tpu_custom_call.1
= control target key start
LH: loop header
LB: loop body
LE: loop exit
PB: predicated region body
PF: predicated region fallthrough
CT: control target
= control target key end

     0   :  { %s1422_s0 = inlined_call_operand.vmem [shape: f32[32,128], index: 0, kind: input, shape index: {}]   ;;  %s1423_s1 = inlined_call_operand.vmem [shape: f32[128,32], index: 1, kind: input, shape index: {}]   ;;  %s1424_s2 = inlined_call_operand.vmem [shape: f32[64,1], index: 2, kind: input, shape index: {}]   ;;  %s1425_s3 = inlined_call_operand.vmem [shape: f32[144,64], index: 3, kind: input, shape index: {}]   ;;  %s1426_s4 = inlined_call_operand.vmem [shape: f32[72,1], index: 4, kind: input, shape index: {}]   ;;  %s1427_s5 = inlined_call_operand.vmem [shape: f32[112,72], index: 5, kind: input, shape index: {}]   ;;  %s1428_s6 = inlined_call_operand.vmem [shape: f32[56,1], index: 6, kind: input, shape index: {}]   ;;  %s1429_s7 = inlined_call_operand.vmem [shape: f32[48,56], index: 7, kind: input, shape index: {}]   ;;  %s1430_s8 = inlined_call_operand.vmem [shape: f32[24,1], index: 8, kind: input, shape index: {}]   ;;  %s1431_s9 = inlined_call_operand.vmem [shape: f32[16,24], index: 9, kind: input, shape index: {}]   ;;  %s1432_s10 = inlined_call_operand.vmem [shape: f32[8,1], index: 10, kind: input, shape index: {}]   ;;  %s1433_s11 = inlined_call_operand.vmem [shape: f32[16,8], index: 11, kind: input, shape index: {}]   ;;  %s1434_s12 = inlined_call_operand.vmem [shape: f32[16,1], index: 12, kind: input, shape index: {}]   ;;  %s1435_s13 = inlined_call_operand.vmem [shape: f32[1,16], index: 13, kind: input, shape index: {}]   ;;  %s1436_s14 = inlined_call_operand.<no memory space> [shape: f32[1,1], index: 14, kind: input, shape index: {}]   ;;  %s1437_s15 = inlined_call_operand.hbm [shape: f32[1,128], index: 15, kind: output, shape index: {}]  }
   0x1   :  { %v20_v0 = vstv %s1436_s14 }
   0x2   :  { %21 = vst [vmem:[#allocation2] sm:$0x1] %v20_v0 }
   0x3   :  { %v56_v1 = vld [vmem:[%s1422_s0 + $0x18] sm:$0xff]  ;;  %v55_v2 = vld [vmem:[%s1422_s0 + $0x10] sm:$0xff]  ;;  %v54_v3 = vld [vmem:[%s1422_s0 + $0x8] sm:$0xff] }
   0x4   :  { %134 = vmatpush.msra.mxu0 %v56_v1 }
   0x6   :  { %135 = vmatpush.msra.mxu0 %v55_v2 }
   0x7   :  { %22 = vsyncpa [#allocation4], 0  ;;  %v53_v4 = vld [vmem:[%s1422_s0] sm:$0xff]  ;;  %vm73_vm0 = vcmask 261120   ;;  %v58_v6 = vld [vmem:[%s1423_s1 + $0x8] sm:$0xff]  ;;  %v1007_v8 = vmov 0  }
   0x8   :  { %136 = vmatpush.msra.mxu0 %v54_v3  ;;  %v57_v5 = vld [vmem:[%s1423_s1] sm:$0xff]  ;;  %v202_v7 = vld [vmem:[%s1424_s2 + $0x38] sm:$0xff]  ;;  %974 = vset.pattern.permute.xlu0 %v1007_v8  ;;  %v59_v9 = vld [vmem:[%s1423_s1 + $0x10] sm:$0xff]  ;;  %vm277_vm1 = vcmask 523264   ;;  %vm498_vm2 = vcmask 588800   ;;  %vm669_vm3 = vcmask 457728  }
   0x9   :  { %975 = vset.pattern.permute.xlu1 %v1007_v8  ;;  %240 = vperm.xlu0 %974, %v202_v7   ;;  %v201_v10 = vld [vmem:[%s1424_s2 + $0x30] sm:$0xff]  ;;  %v60_v11 = vld [vmem:[%s1423_s1 + $0x18] sm:$0xff]  ;;  %v200_v12 = vld [vmem:[%s1424_s2 + $0x28] sm:$0xff]  ;;  %vm752_vm4 = vcmask 195584   ;;  %vm805_vm5 = vcmask 64512   ;;  %vm845_vm6 = vcmask 130048  }
   0xa   :  { %137 = vmatpush.msra.mxu0 %v53_v4  ;;  %976 = vset.pattern.permute.xlu2 %v1007_v8  ;;  %v196_v13 = vld [vmem:[%s1424_s2 + $0x8] sm:$0xff]  ;;  %v61_v14 = vld [vmem:[%s1423_s1 + $0x20] sm:$0xff]  ;;  %v419_v16 = vld [vmem:[%s1426_s4 + $0x38] sm:$0xff]  ;;  %s896_s18 = sshll.u32 %s1437_s15, 4  ;;  %s897_s18 = int_to_ptr.hbm [resolvable:$true] %s896_s18 }
   0xb   :  { %905 = vmatmul.msk.f32.vlgmr.msra.gmra.mxu0 %vm73_vm0, %v57_v5  ;;  %230 = vperm.xlu1 %975, %v200_v12   ;;  %v199_v15 = vld [vmem:[%s1424_s2 + $0x20] sm:$0xff]  ;;  %v62_v17 = vld [vmem:[%s1423_s1 + $0x28] sm:$0xff]  ;;  %v63_v20 = vld [vmem:[%s1423_s1 + $0x30] sm:$0xff] }
   0xc   :  { %v195_v18 = vld [vmem:[%s1424_s2] sm:$0xff]  ;;  %v418_v21 = vld [vmem:[%s1426_s4 + $0x30] sm:$0xff]  ;;  %v198_v22 = vld [vmem:[%s1424_s2 + $0x18] sm:$0xff] }
   0xd   :  { %v416_v19 = vld [vmem:[%s1426_s4 + $0x20] sm:$0xff]  ;;  %v413_v23 = vld [vmem:[%s1426_s4 + $0x8] sm:$0xff]  ;;  %220 = vperm.xlu2 %976, %v198_v22   ;;  %v64_v24 = vld [vmem:[%s1423_s1 + $0x38] sm:$0xff] }
   0xe   :  { %v415_v25 = vld [vmem:[%s1426_s4 + $0x18] sm:$0xff]  ;;  %v197_v26 = vld [vmem:[%s1424_s2 + $0x10] sm:$0xff]  ;;  %v612_v27 = vld [vmem:[%s1428_s6 + $0x28] sm:$0xff] }
   0xf   :  { %v65_v28 = vld [vmem:[%s1423_s1 + $0x40] sm:$0xff]  ;;  %v609_v31 = vld [vmem:[%s1428_s6 + $0x10] sm:$0xff]  ;;  %v66_v32 = vld [vmem:[%s1423_s1 + $0x48] sm:$0xff] }
  0x10   :  { %v412_v29 = vld [vmem:[%s1426_s4] sm:$0xff]  ;;  %v417_v34 = vld [vmem:[%s1426_s4 + $0x28] sm:$0xff]  ;;  %v728_v35 = vld [vmem:[%s1430_s8 + $0x10] sm:$0xff] }
  0x11   :  { %235 = vperm.xlu0 %974, %v201_v10   ;;  %v420_v30 = vld [vmem:[%s1426_s4 + $0x40] sm:$0xff]  ;;  %v67_v36 = vld [vmem:[%s1423_s1 + $0x50] sm:$0xff]  ;;  %v608_v37 = vld [vmem:[%s1428_s6 + $0x8] sm:$0xff] }
  0x12   :  { %v611_v33 = vld [vmem:[%s1428_s6 + $0x20] sm:$0xff]  ;;  %v414_v38 = vld [vmem:[%s1426_s4 + $0x10] sm:$0xff]  ;;  %v68_v40 = vld [vmem:[%s1423_s1 + $0x58] sm:$0xff] }
  0x13   :  { %906 = vmatmul.msk.f32.gmra.mxu0 %vm73_vm0, %v58_v6  ;;  %225 = vperm.xlu1 %975, %v199_v15   ;;  %v783_v39 = vld [vmem:[%s1432_s10] sm:$0xff]  ;;  %v727_v41 = vld [vmem:[%s1430_s8 + $0x8] sm:$0xff]  ;;  %v613_v43 = vld [vmem:[%s1428_s6 + $0x30] sm:$0xff] }
  0x14   :  { %v69_v42 = vld [vmem:[%s1423_s1 + $0x60] sm:$0xff]  ;;  %v794_v45 = vld [vmem:[%s1434_s12 + $0x8] sm:$0xff]  ;;  %v610_v47 = vld [vmem:[%s1428_s6 + $0x18] sm:$0xff] }
  0x15   :  { %215 = vperm.xlu2 %976, %v197_v26   ;;  %v838_v44 = vld [vmem:[#allocation2] sm:$0x1]  ;;  %v70_v46 = vld [vmem:[%s1423_s1 + $0x68] sm:$0xff]  ;;  %v71_v48 = vld [vmem:[%s1423_s1 + $0x70] sm:$0xff] }
  0x16   :  { %v607_v49 = vld [vmem:[%s1428_s6] sm:$0xff]  ;;  %v72_v50 = vld [vmem:[%s1423_s1 + $0x78] sm:$0xff] }
  0x17   :  { %v726_v51 = vld [vmem:[%s1430_s8] sm:$0xff] }
  0x18   :  { %v793_v53 = vld [vmem:[%s1434_s12] sm:$0xff] }
  0x19   :  { %210 = vperm.xlu0 %974, %v196_v13  }
  0x1b   :  { %907 = vmatmul.msk.f32.gmra.mxu0 %vm73_vm0, %v59_v9  ;;  %205 = vperm.xlu1 %975, %v195_v18  }
  0x1d   :  { %463 = vperm.xlu2 %976, %v420_v30  }
  0x21   :  { %458 = vperm.xlu0 %974, %v419_v16  }
  0x23   :  { %908 = vmatmul.msk.f32.gmra.mxu0 %vm73_vm0, %v60_v11  ;;  %453 = vperm.xlu1 %975, %v418_v21  }
  0x25   :  { %448 = vperm.xlu2 %976, %v417_v34  }
  0x29   :  { %443 = vperm.xlu0 %974, %v416_v19  }
  0x2b   :  { %909 = vmatmul.msk.f32.gmra.mxu0 %vm73_vm0, %v61_v14  ;;  %438 = vperm.xlu1 %975, %v415_v25  }
  0x2d   :  { %433 = vperm.xlu2 %976, %v414_v38   ;;  %v260_v38 = vld [vmem:[%s1425_s3 + $0x8] sm:$0xff] }
  0x31   :  { %428 = vperm.xlu0 %974, %v413_v23  }
  0x33   :  { %910 = vmatmul.msk.f32.gmra.mxu0 %vm73_vm0, %v62_v17  ;;  %423 = vperm.xlu1 %975, %v412_v29  }
  0x35   :  { %646 = vperm.xlu2 %976, %v613_v43   ;;  %v276_v43 = vld [vmem:[%s1425_s3 + $0x88] sm:$0xff] }
  0x39   :  { %641 = vperm.xlu0 %974, %v612_v27  }
  0x3b   :  { %911 = vmatmul.msk.f32.gmra.mxu0 %vm73_vm0, %v63_v20  ;;  %636 = vperm.xlu1 %975, %v611_v33  }
  0x3d   :  { %631 = vperm.xlu2 %976, %v610_v47   ;;  %v266_v47 = vld [vmem:[%s1425_s3 + $0x38] sm:$0xff] }
  0x41   :  { %626 = vperm.xlu0 %974, %v609_v31  }
  0x43   :  { %912 = vmatmul.msk.f32.gmra.mxu0 %vm73_vm0, %v64_v24  ;;  %621 = vperm.xlu1 %975, %v608_v37   ;;  %v259_v37 = vld [vmem:[%s1425_s3] sm:$0xff] }
  0x45   :  { %616 = vperm.xlu2 %976, %v607_v49   ;;  %v268_v49 = vld [vmem:[%s1425_s3 + $0x48] sm:$0xff] }
  0x49   :  { %741 = vperm.xlu0 %974, %v728_v35  }
  0x4b   :  { %913 = vmatmul.msk.f32.gmra.mxu0 %vm73_vm0, %v65_v28  ;;  %736 = vperm.xlu1 %975, %v727_v41   ;;  %v275_v41 = vld [vmem:[%s1425_s3 + $0x80] sm:$0xff] }
  0x4d   :  { %731 = vperm.xlu2 %976, %v726_v51   ;;  %v270_v51 = vld [vmem:[%s1425_s3 + $0x58] sm:$0xff] }
  0x51   :  { %786 = vperm.xlu0 %974, %v783_v39   ;;  %v274_v39 = vld [vmem:[%s1425_s3 + $0x78] sm:$0xff] }
  0x53   :  { %914 = vmatmul.msk.f32.gmra.mxu0 %vm73_vm0, %v66_v32  ;;  %802 = vperm.xlu1 %975, %v794_v45   ;;  %v264_v45 = vld [vmem:[%s1425_s3 + $0x28] sm:$0xff] }
  0x55   :  { %797 = vperm.xlu2 %976, %v793_v53   ;;  %v272_v53 = vld [vmem:[%s1425_s3 + $0x68] sm:$0xff] }
  0x59   :  { %841 = vperm.xlu0 %974, %v838_v44   ;;  %v263_v44 = vld [vmem:[%s1425_s3 + $0x20] sm:$0xff] }
  0x5b   :  { %915 = vmatmul.msk.f32.gmra.mxu0 %vm73_vm0, %v67_v36 }
  0x63   :  { %916 = vmatmul.msk.f32.gmra.mxu0 %vm73_vm0, %v68_v40  ;;  %v261_v40 = vld [vmem:[%s1425_s3 + $0x10] sm:$0xff] }
  0x67   :  { %v221_v8 = vpop.permute.xlu2 %220 }
  0x6b   :  { %917 = vmatmul.msk.f32.gmra.mxu0 %vm73_vm0, %v69_v42  ;;  %v262_v42 = vld [vmem:[%s1425_s3 + $0x18] sm:$0xff] }
  0x6f   :  { %v216_v26 = vpop.permute.xlu2 %215 }
  0x73   :  { %918 = vmatmul.msk.f32.gmra.mxu0 %vm73_vm0, %v70_v46  ;;  %v265_v46 = vld [vmem:[%s1425_s3 + $0x30] sm:$0xff] }
  0x7b   :  { %919 = vmatmul.msk.f32.gmra.mxu0 %vm73_vm0, %v71_v48  ;;  %v241_v4 = vpop.permute.xlu0 %240  ;;  %v267_v48 = vld [vmem:[%s1425_s3 + $0x40] sm:$0xff] }
  0x7d   :  { %v231_v6 = vpop.permute.xlu1 %230 }
  0x83   :  { %920 = vmatmul.msk.f32.gmra.mxu0 %vm73_vm0, %v72_v50  ;;  %v236_v12 = vpop.permute.xlu0 %235  ;;  %v269_v50 = vld [vmem:[%s1425_s3 + $0x50] sm:$0xff] }
  0x85   :  { %v226_v16 = vpop.permute.xlu1 %225 }
  0x88   :  { %v139_v52 = vpop.f32.mrf.mxu0 }
  0x8b   :  { %v211_v29 = vpop.permute.xlu0 %210 }
  0x8d   :  { %v206_v32 = vpop.permute.xlu1 %205 }
  0x90   :  { %v142_v54 = vpop.f32.mrf.mxu0 }
  0x98   :  { %v145_v55 = vpop.f32.mrf.mxu0 }
  0xa0   :  { %v148_v56 = vpop.f32.mrf.mxu0 }
  0xa8   :  { %v151_v57 = vpop.f32.mrf.mxu0 }
  0xb0   :  { %v154_v58 = vpop.f32.mrf.mxu0 }
  0xb8   :  { %v157_v59 = vpop.f32.mrf.mxu0 }
  0xc0   :  { %v160_v60 = vpop.f32.mrf.mxu0 }
  0xc8   :  { %v163_v61 = vpop.f32.mrf.mxu0 }
  0xc9   :  { %v187_v62 = vmax.f32 %v139_v52, %v163_v61  ;;  %v271_v52 = vld [vmem:[%s1425_s3 + $0x60] sm:$0xff] }
  0xcb   :  { %v243_v34 = vadd.f32 %v206_v32, %v187_v62 }
  0xcd   :  { %v251_v36 = vmax.f32 %v243_v34, 0.0 }
  0xd0   :  { %v166_v63 = vpop.f32.mrf.mxu0 }
  0xd1   :  { %v188_v23 = vmax.f32 %v142_v54, %v166_v63  ;;  %v273_v54 = vld [vmem:[%s1425_s3 + $0x70] sm:$0xff] }
  0xd3   :  { %v244_v31 = vadd.f32 %v211_v29, %v188_v23 }
  0xd5   :  { %v252_v35 = vmax.f32 %v244_v31, 0.0 }
  0xd8   :  { %v169_v0 = vpop.f32.mrf.mxu0 }
  0xd9   :  { %v189_v20 = vmax.f32 %v145_v55, %v169_v0 }
  0xdb   :  { %v245_v28 = vadd.f32 %v216_v26, %v189_v20 }
  0xdd   :  { %v253_v33 = vmax.f32 %v245_v28, 0.0 }
  0xe0   :  { %v172_v1 = vpop.f32.mrf.mxu0 }
  0xe1   :  { %v190_v17 = vmax.f32 %v148_v56, %v172_v1 }
  0xe3   :  { %v246_v25 = vadd.f32 %v221_v8, %v190_v17 }
  0xe5   :  { %v254_v30 = vmax.f32 %v246_v25, 0.0 }
  0xe8   :  { %v175_v2 = vpop.f32.mrf.mxu0 }
  0xe9   :  { %v191_v13 = vmax.f32 %v151_v57, %v175_v2 }
  0xeb   :  { %v247_v22 = vadd.f32 %v226_v16, %v191_v13 }
  0xed   :  { %v255_v27 = vmax.f32 %v247_v22, 0.0 }
  0xf0   :  { %v178_v3 = vpop.f32.mrf.mxu0 }
  0xf1   :  { %v192_v10 = vmax.f32 %v154_v58, %v178_v3 }
  0xf3   :  { %v248_v19 = vadd.f32 %v231_v6, %v192_v10  ;;  %v459_v6 = vpop.permute.xlu0 %458  ;;  %v454_v10 = vpop.permute.xlu1 %453 }
  0xf5   :  { %v256_v24 = vmax.f32 %v248_v19, 0.0 }
  0xf8   :  { %v181_v5 = vpop.f32.mrf.mxu0 }
  0xf9   :  { %v193_v7 = vmax.f32 %v157_v59, %v181_v5 }
  0xfb   :  { %v249_v15 = vadd.f32 %v236_v12, %v193_v7  ;;  %v464_v7 = vpop.permute.xlu2 %463  ;;  %v439_v23 = vpop.permute.xlu1 %438 }
  0xfd   :  { %v257_v21 = vmax.f32 %v249_v15, 0.0 }
 0x100   :  { %v184_v9 = vpop.f32.mrf.mxu0 }
 0x101   :  { %v194_v11 = vmax.f32 %v160_v60, %v184_v9 }
 0x103   :  { %v250_v14 = vadd.f32 %v241_v4, %v194_v11  ;;  %v449_v20 = vpop.permute.xlu2 %448 }
 0x105   :  { %v258_v18 = vmax.f32 %v250_v14, 0.0 }
 0x107   :  { %340 = vmatpush.msra.mxu1 %v258_v18  ;;  %964 = vmatpush.msra.mxu3 %v258_v18 }
 0x109   :  { %341 = vmatpush.msra.mxu1 %v257_v21  ;;  %965 = vmatpush.msra.mxu3 %v257_v21  ;;  %v444_v21 = vpop.permute.xlu0 %443 }
 0x10b   :  { %342 = vmatpush.msra.mxu1 %v256_v24  ;;  %966 = vmatpush.msra.mxu3 %v256_v24 }
 0x10d   :  { %343 = vmatpush.msra.mxu1 %v255_v27  ;;  %967 = vmatpush.msra.mxu3 %v255_v27 }
 0x10f   :  { %344 = vmatpush.msra.mxu1 %v254_v30  ;;  %968 = vmatpush.msra.mxu3 %v254_v30 }
 0x111   :  { %345 = vmatpush.msra.mxu1 %v253_v33  ;;  %969 = vmatpush.msra.mxu3 %v253_v33  ;;  %v434_v33 = vpop.permute.xlu2 %433 }
 0x113   :  { %346 = vmatpush.msra.mxu1 %v252_v35  ;;  %970 = vmatpush.msra.mxu3 %v252_v35 }
 0x115   :  { %347 = vmatpush.msra.mxu1 %v251_v36  ;;  %971 = vmatpush.msra.mxu3 %v251_v36 }
 0x116   :  { %921 = vmatmul.msk.f32.vlgmr.msra.gmra.mxu1 %vm277_vm1, %v259_v37  ;;  %936 = vmatmul.msk.f32.vlgmr.msra.gmra.mxu3 %vm277_vm1, %v274_v39  ;;  %v429_v37 = vpop.permute.xlu0 %428 }
 0x11e   :  { %922 = vmatmul.msk.f32.gmra.mxu1 %vm277_vm1, %v260_v38  ;;  %937 = vmatmul.msk.f32.gmra.mxu3 %vm277_vm1, %v275_v41 }
 0x126   :  { %923 = vmatmul.msk.f32.gmra.mxu1 %vm277_vm1, %v261_v40  ;;  %938 = vmatmul.msk.f32.gmra.mxu3 %vm277_vm1, %v276_v43  ;;  %v424_v40 = vpop.permute.xlu1 %423 }
 0x12e   :  { %924 = vmatmul.msk.f32.gmra.mxu1 %vm277_vm1, %v262_v42 }
 0x136   :  { %925 = vmatmul.msk.f32.gmra.mxu1 %vm277_vm1, %v263_v44 }
 0x13e   :  { %926 = vmatmul.msk.f32.gmra.mxu1 %vm277_vm1, %v264_v45  ;;  %v484_v45 = vld [vmem:[%s1427_s5] sm:$0xff] }
 0x146   :  { %927 = vmatmul.msk.f32.gmra.mxu1 %vm277_vm1, %v265_v46  ;;  %v485_v46 = vld [vmem:[%s1427_s5 + $0x8] sm:$0xff] }
 0x14e   :  { %928 = vmatmul.msk.f32.gmra.mxu1 %vm277_vm1, %v266_v47  ;;  %v486_v47 = vld [vmem:[%s1427_s5 + $0x10] sm:$0xff] }
 0x156   :  { %929 = vmatmul.msk.f32.gmra.mxu1 %vm277_vm1, %v267_v48  ;;  %v487_v48 = vld [vmem:[%s1427_s5 + $0x18] sm:$0xff] }
 0x15e   :  { %930 = vmatmul.msk.f32.gmra.mxu1 %vm277_vm1, %v268_v49  ;;  %v488_v49 = vld [vmem:[%s1427_s5 + $0x20] sm:$0xff] }
 0x166   :  { %931 = vmatmul.msk.f32.gmra.mxu1 %vm277_vm1, %v269_v50  ;;  %v489_v50 = vld [vmem:[%s1427_s5 + $0x28] sm:$0xff] }
 0x16e   :  { %932 = vmatmul.msk.f32.gmra.mxu1 %vm277_vm1, %v270_v51  ;;  %v490_v51 = vld [vmem:[%s1427_s5 + $0x30] sm:$0xff] }
 0x176   :  { %933 = vmatmul.msk.f32.gmra.mxu1 %vm277_vm1, %v271_v52  ;;  %v491_v52 = vld [vmem:[%s1427_s5 + $0x38] sm:$0xff] }
 0x17e   :  { %934 = vmatmul.msk.f32.gmra.mxu1 %vm277_vm1, %v272_v53  ;;  %v492_v53 = vld [vmem:[%s1427_s5 + $0x40] sm:$0xff] }
 0x186   :  { %935 = vmatmul.msk.f32.gmra.mxu1 %vm277_vm1, %v273_v54  ;;  %v493_v54 = vld [vmem:[%s1427_s5 + $0x48] sm:$0xff] }
 0x193   :  { %v349_v55 = vpop.f32.mrf.mxu1 }
 0x199   :  { %v394_v61 = vpop.f32.mrf.mxu3 }
 0x19b   :  { %v352_v56 = vpop.f32.mrf.mxu1 }
 0x1a1   :  { %v397_v63 = vpop.f32.mrf.mxu3 }
 0x1a3   :  { %v355_v57 = vpop.f32.mrf.mxu1 }
 0x1a9   :  { %v400_v1 = vpop.f32.mrf.mxu3 }
 0x1ab   :  { %v358_v58 = vpop.f32.mrf.mxu1 }
 0x1b3   :  { %v361_v59 = vpop.f32.mrf.mxu1 }
 0x1bb   :  { %v364_v60 = vpop.f32.mrf.mxu1 }
 0x1c3   :  { %v367_v62 = vpop.f32.mrf.mxu1 }
 0x1c4   :  { %v409_v4 = vmax.f32 %v367_v62, %v394_v61 }
 0x1c6   :  { %v472_v12 = vadd.f32 %v454_v10, %v409_v4 }
 0x1c8   :  { %v481_v15 = vmax.f32 %v472_v12, 0.0 }
 0x1cb   :  { %v370_v0 = vpop.f32.mrf.mxu1 }
 0x1cc   :  { %v410_v2 = vmax.f32 %v370_v0, %v397_v63 }
 0x1ce   :  { %v473_v9 = vadd.f32 %v459_v6, %v410_v2 }
 0x1d0   :  { %v482_v13 = vmax.f32 %v473_v9, 0.0  ;;  %v642_v9 = vpop.permute.xlu0 %641 }
 0x1d3   :  { %v373_v3 = vpop.f32.mrf.mxu1 }
 0x1d4   :  { %v411_v5 = vmax.f32 %v373_v3, %v400_v1 }
 0x1d6   :  { %v474_v8 = vadd.f32 %v464_v7, %v411_v5  ;;  %v647_v7 = vpop.permute.xlu2 %646 }
 0x1d8   :  { %v483_v11 = vmax.f32 %v474_v8, 0.0 }
 0x1da   :  { %548 = vmatpush.msra.mxu2 %v483_v11  ;;  %v637_v11 = vpop.permute.xlu1 %636 }
 0x1db   :  { %v376_v14 = vpop.f32.mrf.mxu1 }
 0x1dc   :  { %549 = vmatpush.msra.mxu2 %v482_v13  ;;  %v403_v34 = vmax.f32 %v349_v55, %v376_v14  ;;  %v494_v55 = vld [vmem:[%s1427_s5 + $0x50] sm:$0xff] }
 0x1de   :  { %550 = vmatpush.msra.mxu2 %v481_v15  ;;  %v466_v42 = vadd.f32 %v424_v40, %v403_v34  ;;  %v632_v15 = vpop.permute.xlu2 %631  ;;  %v666_v40 = vld [vmem:[%s1429_s7 + $0x18] sm:$0xff] }
 0x1e0   :  { %v475_v44 = vmax.f32 %v466_v42, 0.0  ;;  %v668_v42 = vld [vmem:[%s1429_s7 + $0x28] sm:$0xff] }
 0x1e3   :  { %v379_v16 = vpop.f32.mrf.mxu1 }
 0x1e4   :  { %v404_v30 = vmax.f32 %v352_v56, %v379_v16  ;;  %v495_v56 = vld [vmem:[%s1427_s5 + $0x58] sm:$0xff] }
 0x1e6   :  { %v467_v39 = vadd.f32 %v429_v37, %v404_v30  ;;  %v663_v37 = vld [vmem:[%s1429_s7] sm:$0xff] }
 0x1e8   :  { %v476_v43 = vmax.f32 %v467_v39, 0.0  ;;  %v665_v39 = vld [vmem:[%s1429_s7 + $0x10] sm:$0xff] }
 0x1eb   :  { %v382_v17 = vpop.f32.mrf.mxu1 }
 0x1ec   :  { %v405_v27 = vmax.f32 %v355_v57, %v382_v17  ;;  %v496_v57 = vld [vmem:[%s1427_s5 + $0x60] sm:$0xff] }
 0x1ee   :  { %v468_v36 = vadd.f32 %v434_v33, %v405_v27 }
 0x1f0   :  { %v477_v41 = vmax.f32 %v468_v36, 0.0 }
 0x1f3   :  { %v385_v18 = vpop.f32.mrf.mxu1 }
 0x1f4   :  { %v406_v25 = vmax.f32 %v358_v58, %v385_v18  ;;  %v497_v58 = vld [vmem:[%s1427_s5 + $0x68] sm:$0xff] }
 0x1f6   :  { %v469_v32 = vadd.f32 %v439_v23, %v406_v25  ;;  %v627_v25 = vpop.permute.xlu0 %626 }
 0x1f8   :  { %v478_v38 = vmax.f32 %v469_v32, 0.0  ;;  %v617_v32 = vpop.permute.xlu2 %616 }
 0x1fb   :  { %v388_v19 = vpop.f32.mrf.mxu1 }
 0x1fc   :  { %v407_v22 = vmax.f32 %v361_v59, %v388_v19 }
 0x1fe   :  { %v470_v29 = vadd.f32 %v444_v21, %v407_v22 }
 0x200   :  { %v479_v35 = vmax.f32 %v470_v29, 0.0  ;;  %v622_v29 = vpop.permute.xlu1 %621 }
 0x203   :  { %v391_v24 = vpop.f32.mrf.mxu1 }
 0x204   :  { %v408_v26 = vmax.f32 %v364_v60, %v391_v24 }
 0x206   :  { %v471_v28 = vadd.f32 %v449_v20, %v408_v26 }
 0x208   :  { %v480_v31 = vmax.f32 %v471_v28, 0.0 }
 0x20a   :  { %551 = vmatpush.msra.mxu2 %v480_v31 }
 0x20c   :  { %552 = vmatpush.msra.mxu2 %v479_v35 }
 0x20e   :  { %553 = vmatpush.msra.mxu2 %v478_v38  ;;  %v664_v38 = vld [vmem:[%s1429_s7 + $0x8] sm:$0xff] }
 0x210   :  { %554 = vmatpush.msra.mxu2 %v477_v41  ;;  %v667_v41 = vld [vmem:[%s1429_s7 + $0x20] sm:$0xff] }
 0x212   :  { %555 = vmatpush.msra.mxu2 %v476_v43 }
 0x214   :  { %556 = vmatpush.msra.mxu2 %v475_v44 }
 0x215   :  { %939 = vmatmul.msk.f32.vlgmr.msra.gmra.mxu2 %vm498_vm2, %v484_v45 }
 0x21d   :  { %940 = vmatmul.msk.f32.gmra.mxu2 %vm498_vm2, %v485_v46 }
 0x225   :  { %941 = vmatmul.msk.f32.gmra.mxu2 %vm498_vm2, %v486_v47 }
 0x22d   :  { %942 = vmatmul.msk.f32.gmra.mxu2 %vm498_vm2, %v487_v48 }
 0x235   :  { %943 = vmatmul.msk.f32.gmra.mxu2 %vm498_vm2, %v488_v49 }
 0x23d   :  { %944 = vmatmul.msk.f32.gmra.mxu2 %vm498_vm2, %v489_v50 }
 0x245   :  { %945 = vmatmul.msk.f32.gmra.mxu2 %vm498_vm2, %v490_v51 }
 0x24d   :  { %946 = vmatmul.msk.f32.gmra.mxu2 %vm498_vm2, %v491_v52  ;;  %v742_v52 = vpop.permute.xlu0 %741 }
 0x255   :  { %947 = vmatmul.msk.f32.gmra.mxu2 %vm498_vm2, %v492_v53  ;;  %v737_v53 = vpop.permute.xlu1 %736 }
 0x25d   :  { %948 = vmatmul.msk.f32.gmra.mxu2 %vm498_vm2, %v493_v54 }
 0x265   :  { %949 = vmatmul.msk.f32.gmra.mxu2 %vm498_vm2, %v494_v55 }
 0x26d   :  { %950 = vmatmul.msk.f32.gmra.mxu2 %vm498_vm2, %v495_v56  ;;  %v732_v56 = vpop.permute.xlu2 %731 }
 0x275   :  { %951 = vmatmul.msk.f32.gmra.mxu2 %vm498_vm2, %v496_v57 }
 0x27d   :  { %952 = vmatmul.msk.f32.gmra.mxu2 %vm498_vm2, %v497_v58 }
 0x298   :  { %v558_v59 = vpop.f32.mrf.mxu2 }
 0x2a0   :  { %v561_v60 = vpop.f32.mrf.mxu2 }
 0x2a8   :  { %v564_v61 = vpop.f32.mrf.mxu2 }
 0x2b0   :  { %v567_v62 = vpop.f32.mrf.mxu2 }
 0x2b8   :  { %v570_v63 = vpop.f32.mrf.mxu2 }
 0x2c0   :  { %v573_v0 = vpop.f32.mrf.mxu2 }
 0x2c8   :  { %v576_v1 = vpop.f32.mrf.mxu2 }
 0x2d0   :  { %v579_v2 = vpop.f32.mrf.mxu2 }
 0x2d1   :  { %v600_v26 = vmax.f32 %v558_v59, %v579_v2  ;;  %v787_v2 = vpop.permute.xlu0 %786 }
 0x2d3   :  { %v649_v34 = vadd.f32 %v617_v32, %v600_v26 }
 0x2d5   :  { %v656_v36 = vmax.f32 %v649_v34, 0.0 }
 0x2d8   :  { %v582_v3 = vpop.f32.mrf.mxu2 }
 0x2d9   :  { %v601_v22 = vmax.f32 %v561_v60, %v582_v3 }
 0x2db   :  { %v650_v31 = vadd.f32 %v622_v29, %v601_v22 }
 0x2dd   :  { %v657_v35 = vmax.f32 %v650_v31, 0.0 }
 0x2e0   :  { %v585_v4 = vpop.f32.mrf.mxu2 }
 0x2e1   :  { %v602_v19 = vmax.f32 %v564_v61, %v585_v4  ;;  %v750_v61 = vld [vmem:[%s1431_s9] sm:$0xff] }
 0x2e3   :  { %v651_v28 = vadd.f32 %v627_v25, %v602_v19 }
 0x2e5   :  { %v658_v33 = vmax.f32 %v651_v28, 0.0 }
 0x2e8   :  { %v588_v5 = vpop.f32.mrf.mxu2 }
 0x2e9   :  { %v603_v16 = vmax.f32 %v567_v62, %v588_v5  ;;  %v751_v62 = vld [vmem:[%s1431_s9 + $0x8] sm:$0xff]  ;;  %v791_v5 = vld [vmem:[%s1433_s11] sm:$0xff] }
 0x2eb   :  { %v652_v24 = vadd.f32 %v632_v15, %v603_v16  ;;  %v837_v15 = vld [vmem:[%s1435_s13] sm:$0x1]  ;;  %v842_v16 = vpop.permute.xlu0 %841 }
 0x2ed   :  { %v659_v30 = vmax.f32 %v652_v24, 0.0 }
 0x2f0   :  { %v591_v6 = vpop.f32.mrf.mxu2 }
 0x2f1   :  { %v604_v13 = vmax.f32 %v570_v63, %v591_v6  ;;  %v792_v6 = vld [vmem:[%s1433_s11 + $0x8] sm:$0xff]  ;;  %s1008_s11 = smov [#allocation3]  }
 0x2f2   :  { %s894_s13 = sshll.u32 %s1008_s11, 4  ;;  %s895_s13 = int_to_ptr.vmem [resolvable:$true] %s894_s13 }
 0x2f3   :  { %v653_v21 = vadd.f32 %v637_v11, %v604_v13 }
 0x2f5   :  { %v660_v27 = vmax.f32 %v653_v21, 0.0 }
 0x2f8   :  { %v594_v8 = vpop.f32.mrf.mxu2 }
 0x2f9   :  { %v605_v10 = vmax.f32 %v573_v0, %v594_v8  ;;  %v803_v8 = vpop.permute.xlu1 %802 }
 0x2fb   :  { %v654_v18 = vadd.f32 %v642_v9, %v605_v10  ;;  %v798_v9 = vpop.permute.xlu2 %797 }
 0x2fd   :  { %v661_v23 = vmax.f32 %v654_v18, 0.0 }
 0x300   :  { %v597_v12 = vpop.f32.mrf.mxu2 }
 0x301   :  { %v606_v14 = vmax.f32 %v576_v1, %v597_v12 }
 0x303   :  { %v655_v17 = vadd.f32 %v647_v7, %v606_v14 }
 0x305   :  { %v662_v20 = vmax.f32 %v655_v17, 0.0  ;;  %v844_v17 = vperm.slane %v842_v16, 0 }
 0x307   :  { %697 = vmatpush.msrb.mxu3 %v662_v20 }
 0x309   :  { %698 = vmatpush.msrb.mxu3 %v661_v23 }
 0x30b   :  { %699 = vmatpush.msrb.mxu3 %v660_v27 }
 0x30d   :  { %700 = vmatpush.msrb.mxu3 %v659_v30 }
 0x30f   :  { %701 = vmatpush.msrb.mxu3 %v658_v33 }
 0x311   :  { %702 = vmatpush.msrb.mxu3 %v657_v35 }
 0x313   :  { %703 = vmatpush.msrb.mxu3 %v656_v36 }
 0x314   :  { %953 = vmatmul.msk.f32.vlgmr.msrb.gmra.mxu3 %vm669_vm3, %v663_v37 }
 0x31c   :  { %954 = vmatmul.msk.f32.gmra.mxu3 %vm669_vm3, %v664_v38 }
 0x324   :  { %955 = vmatmul.msk.f32.gmra.mxu3 %vm669_vm3, %v665_v39 }
 0x32c   :  { %956 = vmatmul.msk.f32.gmra.mxu3 %vm669_vm3, %v666_v40 }
 0x334   :  { %957 = vmatmul.msk.f32.gmra.mxu3 %vm669_vm3, %v667_v41 }
 0x33c   :  { %958 = vmatmul.msk.f32.gmra.mxu3 %vm669_vm3, %v668_v42 }
 0x397   :  { %v705_v43 = vpop.f32.mrf.mxu3 }
 0x39f   :  { %v708_v44 = vpop.f32.mrf.mxu3 }
 0x3a7   :  { %v711_v45 = vpop.f32.mrf.mxu3 }
 0x3af   :  { %v714_v46 = vpop.f32.mrf.mxu3 }
 0x3b0   :  { %v723_v50 = vmax.f32 %v705_v43, %v714_v46 }
 0x3b2   :  { %v744_v57 = vadd.f32 %v732_v56, %v723_v50 }
 0x3b4   :  { %v747_v60 = vmax.f32 %v744_v57, 0.0 }
 0x3b7   :  { %v717_v47 = vpop.f32.mrf.mxu3 }
 0x3b8   :  { %v724_v48 = vmax.f32 %v708_v44, %v717_v47 }
 0x3ba   :  { %v745_v54 = vadd.f32 %v737_v53, %v724_v48 }
 0x3bc   :  { %v748_v59 = vmax.f32 %v745_v54, 0.0 }
 0x3bf   :  { %v720_v49 = vpop.f32.mrf.mxu3 }
 0x3c0   :  { %v725_v51 = vmax.f32 %v711_v45, %v720_v49 }
 0x3c2   :  { %v746_v55 = vadd.f32 %v742_v52, %v725_v51 }
 0x3c4   :  { %v749_v58 = vmax.f32 %v746_v55, 0.0 }
 0x3c6   :  { %772 = vmatpush.msra.mxu3 %v749_v58 }
 0x3c8   :  { %773 = vmatpush.msra.mxu3 %v748_v59 }
 0x3ca   :  { %774 = vmatpush.msra.mxu3 %v747_v60 }
 0x3cb   :  { %959 = vmatmul.msk.f32.vlgmr.msra.gmra.mxu3 %vm752_vm4, %v750_v61 }
 0x3d3   :  { %960 = vmatmul.msk.f32.gmra.mxu3 %vm752_vm4, %v751_v62 }
 0x44e   :  { %v776_v63 = vpop.f32.mrf.mxu3 }
 0x456   :  { %v779_v0 = vpop.f32.mrf.mxu3 }
 0x457   :  { %v782_v1 = vmax.f32 %v776_v63, %v779_v0 }
 0x459   :  { %v789_v3 = vadd.f32 %v787_v2, %v782_v1 }
 0x45b   :  { %v790_v4 = vmax.f32 %v789_v3, 0.0 }
 0x45d   :  { %827 = vmatpush.msrb.mxu3 %v790_v4 }
 0x45e   :  { %961 = vmatmul.msk.f32.vlgmr.msrb.gmra.mxu3 %vm805_vm5, %v791_v5 }
 0x466   :  { %962 = vmatmul.msk.f32.gmra.mxu3 %vm805_vm5, %v792_v6 }
 0x4e1   :  { %v829_v7 = vpop.f32.mrf.mxu3 }
 0x4e2   :  { %v830_v11 = vadd.f32 %v829_v7, %v798_v9 }
 0x4e4   :  { %v835_v14 = vmax.f32 %v830_v11, 0.0 }
 0x4e9   :  { %v832_v10 = vpop.f32.mrf.mxu3 }
 0x4ea   :  { %v833_v12 = vadd.f32 %v832_v10, %v803_v8 }
 0x4ec   :  { %v836_v13 = vmax.f32 %v833_v12, 0.0 }
 0x4ee   :  { %863 = vmatpush.msra.mxu3 %v836_v13 }
 0x4f0   :  { %864 = vmatpush.msra.mxu3 %v835_v14 }
 0x4f1   :  { %963 = vmatmul.msk.f32.vlgmr.msra.gmra.mxu3 %vm845_vm6, %v837_v15 }
 0x574   :  { %v866_v18 = vpop.f32.mrf.mxu3 }
 0x575   :  { %v867_v19 = vadd.f32 %v866_v18, %v844_v17 }
 0x577   :  { %v869_v20 = vsub.f32 0.0, %v867_v19 }
 0x579   :  { %v870_v21 = vmul.f32 1.442695, %v869_v20 }
 0x57b   :  { %977 = vpow2.f32 %v870_v21 }
 0x581   :  { %v978_v22 = vpop.eup %977 }
 0x582   :  { %v872_v23 = vadd.f32 1.0, %v978_v22 }
 0x584   :  { %979 = vrcp.f32 %v872_v23  ;;  %v884_v27 = vand.u32 2147483648, %v872_v23  ;;  %v882_v29 = vand.u32 2147483647, %v872_v23  ;;  %vm878_vm8 = vweird.f32 %v872_v23 }
 0x586   :  { %v885_v31 = vor.u32 1.1754944e-38, %v884_v27  ;;  %vm883_vm10 = vcmp.eq.f32.partialorder %v882_v29, 8.507059e+37 }
 0x58a   :  { %v980_v24 = vpop.eup %979 }
 0x58b   :  { %v874_v25 = vmul.f32 %v980_v24, %v872_v23  ;;  %vm879_vm7 = vweird.f32 %v980_v24 }
 0x58c   :  { %vm880_vm9 = vmor %vm878_vm8, %vm879_vm7 }
 0x58d   :  { %v875_v26 = vsub.f32 1.0, %v874_v25 }
 0x58f   :  { %v876_v28 = vmul.f32 %v980_v24, %v875_v26 }
 0x591   :  { %v877_v30 = vadd.f32 %v980_v24, %v876_v28 }
 0x593   :  { %v881_v32 = vsel %vm880_vm9, %v980_v24, %v877_v30 }
 0x594   :  { %v886_v33 = vsel %vm883_vm10, %v885_v31, %v881_v32 }
 0x595   :  { %888 = vst [vmem:[#allocation3] sm:$0x1] %v886_v33 }
 0x596   :  { %899 = dma.vmem_to_hbm [thread:$0]  %s895_s13, 16, %s897_s18, [#allocation4]  }
 0x597   :  { %1005 = dma.done.wait [#allocation4], 16  }
 0x598   :  { %1006 = vsyncadd [#allocation4], 4294967280 }
 0x599   :  { %904 = vsyncpa [#allocation4], 1 }

</bundles_post_ra>
